<compile_context>
chip_gen: v5e
topology: v5e:2x2
jax: 0.10.0
libtpu: 0.0.40
codegen_flags: <defaults>
</compile_context>

<pallas_src>
import numpy as np

import jax
import jax.numpy as jnp
from jax.experimental import pallas as pl
from jax.experimental.pallas import tpu as pltpu


# ----------------------------------------------------------------------------
# Host-side layer math (used both for weight folding and the correctness ref)
# ----------------------------------------------------------------------------
def _conv3d(x, w, b, stride, pad):
    out = jax.lax.conv_general_dilated(
        x, w, window_strides=(stride,) * 3, padding=[(pad, pad)] * 3,
        dimension_numbers=("NCDHW", "OIDHW", "NCDHW"),
        precision=jax.lax.Precision.HIGHEST)
    return out + b[None, :, None, None, None]


def _convT3d(x, w, b):
    # ConvTranspose3d with kernel == stride == 2, padding 0 (non-overlapping).
    B, Cin, D, H, W = x.shape
    _, Cout, k, _, _ = w.shape
    out = jnp.einsum("bcdhw,coijk->bodihjwk", x, w,
                     precision=jax.lax.Precision.HIGHEST)
    return out.reshape(B, Cout, D * k, H * k, W * k) + b[None, :, None, None, None]


def _fold_linear_op(fn, in_shape):
    """Return (W, b_row) such that flatten(fn(x)) == flatten(x) @ W + b_row for
    any batch x of shape (B, *in_shape).  fn must be linear-plus-bias (conv /
    conv-transpose); flatten order is C-order over in_shape, i.e. identical to
    torch's .flatten()/.view()."""
    fin = int(np.prod(in_shape))
    basis = jnp.eye(fin, dtype=jnp.float32).reshape((fin,) + tuple(in_shape))
    zero = jnp.zeros((1,) + tuple(in_shape), jnp.float32)
    b_row = fn(zero).reshape(1, -1)            # response to zero input = bias
    w = fn(basis).reshape(fin, -1) - b_row     # pure linear part
    return np.asarray(w), np.asarray(b_row)


def prepare_params(params, input_shape=(1, 8, 8, 8)):
    """Fold torch-layout parameters into the 5 dense GEMM operands used by the
    fused kernel (one per conv layer + one fused bottleneck/unbottleneck)."""
    in_shape = tuple(input_shape)

    enc1 = lambda x: _conv3d(x, params["enc1_w"], params["enc1_b"], 2, 1)
    enc2 = lambda x: _conv3d(x, params["enc2_w"], params["enc2_b"], 2, 1)
    dec1 = lambda x: _convT3d(x, params["dec1_w"], params["dec1_b"])
    dec2 = lambda x: _convT3d(x, params["dec2_w"], params["dec2_b"])

    # Infer intermediate feature shapes exactly like torch's dummy forward.
    f1_shape = enc1(jnp.zeros((1,) + in_shape, jnp.float32)).shape[1:]
    f2_shape = enc2(jnp.zeros((1,) + f1_shape, jnp.float32)).shape[1:]
    d1_shape = dec1(jnp.zeros((1,) + f2_shape, jnp.float32)).shape[1:]

    W_e1, b_e1 = _fold_linear_op(enc1, in_shape)
    W_e2, b_e2 = _fold_linear_op(enc2, f1_shape)
    W_d1, b_d1 = _fold_linear_op(dec1, f2_shape)
    W_d2, b_d2 = _fold_linear_op(dec2, d1_shape)

    # Bottleneck + unbottleneck fused into one linear map.  Exact because there
    # is no nonlinearity between the two Linear layers and z is not returned.
    Wb = np.asarray(params["bneck_w"])      # (latent, flat)
    bb = np.asarray(params["bneck_b"])      # (latent,)
    Wu = np.asarray(params["unbneck_w"])    # (flat, latent)
    bu = np.asarray(params["unbneck_b"])    # (flat,)
    W_mid = (Wu @ Wb).T                                  # (flat, flat)
    b_mid = (bb @ Wu.T + bu).reshape(1, -1)              # (1, flat)

    bf16 = lambda a: jnp.asarray(a, jnp.bfloat16)   # MXU operands
    f32 = lambda a: jnp.asarray(a, jnp.float32)     # f32 bias epilogue
    return {
        "W_e1": bf16(W_e1), "b_e1": f32(b_e1),
        "W_e2": bf16(W_e2), "b_e2": f32(b_e2),
        "W_mid": bf16(W_mid), "b_mid": f32(b_mid),
        "W_d1": bf16(W_d1), "b_d1": f32(b_d1),
        "W_d2": bf16(W_d2), "b_d2": f32(b_d2),
    }


# ----------------------------------------------------------------------------
# The fused Pallas kernel: TB samples per grid step, everything in VMEM
# ----------------------------------------------------------------------------
def _fused_forward_kernel(
    x_ref,
    we1_ref, be1_ref,
    we2_ref, be2_ref,
    wm_ref, bm_ref,
    wd1_ref, bd1_ref,
    wd2_ref, bd2_ref,
    o_ref,
):
    def layer(a_bf16, w_ref, b_ref, relu):
        # bf16 x bf16 GEMM with f32 accumulation on the MXU, f32 epilogue.
        acc = jnp.dot(a_bf16, w_ref[...], preferred_element_type=jnp.float32)
        acc = acc + b_ref[...]
        if relu:
            acc = jnp.maximum(acc, 0.0)
        return acc

    x = x_ref[...].astype(jnp.bfloat16)                       # (TB, 512)

    h = layer(x, we1_ref, be1_ref, True).astype(jnp.bfloat16)   # encoder conv1
    h = layer(h, we2_ref, be2_ref, True).astype(jnp.bfloat16)   # encoder conv2
    h = layer(h, wm_ref, bm_ref, False).astype(jnp.bfloat16)    # bneck+unbneck
    h = layer(h, wd1_ref, bd1_ref, True).astype(jnp.bfloat16)   # decoder convT1
    y = layer(h, wd2_ref, bd2_ref, False)                       # decoder convT2

    o_ref[...] = y.astype(o_ref.dtype)                          # (TB, 512) f32


_PARAM_ORDER = ("W_e1", "b_e1", "W_e2", "b_e2", "W_mid", "b_mid",
                "W_d1", "b_d1", "W_d2", "b_d2")


def _resident_spec(arr):
    # Full-array block whose block index never changes -> stays VMEM resident.
    nd = arr.ndim
    return pl.BlockSpec(arr.shape, lambda b, _nd=nd: (0,) * _nd)


def _round_up(n, m):
    return ((n + m - 1) // m) * m


@jax.jit
def conv_autoencoder_forward(kparams, x):
    """x: (B, C, D, H, W) float32 -> x_hat: (B, C, D, H, W) float32."""
    B = x.shape[0]
    vol_shape = x.shape[1:]
    f_in = int(np.prod(vol_shape))
    f_out = kparams["W_d2"].shape[1]
    assert f_out == f_in, (f_out, f_in)   # autoencoder: same volume in and out

    # Batch tiling: TB samples per grid step (multiple of 8 for clean sublane
    # tiling); keep the step count even / >= 2 where possible so the two v7x
    # TensorCores are both busy under dimension_semantics=("parallel",).
    TB = min(128, _round_up(pl.cdiv(max(B, 2), 2), 8))
    n_blocks = pl.cdiv(B, TB)
    if n_blocks > 1 and n_blocks % 2:
        n_blocks += 1
    B_pad = n_blocks * TB

    x_slab = x.reshape(B, f_in).astype(jnp.float32)
    if B_pad != B:
        x_slab = jnp.pad(x_slab, ((0, B_pad - B), (0, 0)))

    in_specs = [pl.BlockSpec((TB, f_in), lambda b: (b, 0))]
    in_specs += [_resident_spec(kparams[name]) for name in _PARAM_ORDER]
    operands = [x_slab] + [kparams[name] for name in _PARAM_ORDER]

    y_slab = pl.pallas_call(
        _fused_forward_kernel,
        out_shape=jax.ShapeDtypeStruct((B_pad, f_out), jnp.float32),
        grid=(n_blocks,),
        in_specs=in_specs,
        out_specs=pl.BlockSpec((TB, f_out), lambda b: (b, 0)),
        compiler_params=pltpu.CompilerParams(
            dimension_semantics=("parallel",),        # megacore sharding on v7x
            vmem_limit_bytes=8 * 1024 * 1024,         # weights + 2x blocks + slack
        ),
    )(*operands)

    return y_slab[:B].reshape(B, *vol_shape)


# ----------------------------------------------------------------------------
# Torch-layout parameter init + pure-JAX reference (for a correctness check)
# ----------------------------------------------------------------------------
def init_params(key):
    def w(k, shape, fan_in):
        return jax.random.normal(k, shape, jnp.float32) / jnp.sqrt(jnp.float32(fan_in))

    def bias(k, n):
        return 0.1 * jax.random.normal(k, (n,), jnp.float32)

    ks = jax.random.split(key, 12)
    latent = 32
    flat = 8 * 2 * 2 * 2
    return {
        "enc1_w": w(ks[0], (4, 1, 3, 3, 3), 1 * 27), "enc1_b": bias(ks[1], 4),
        "enc2_w": w(ks[2], (8, 4, 3, 3, 3), 4 * 27), "enc2_b": bias(ks[3], 8),
        "bneck_w": w(ks[4], (latent, flat), flat), "bneck_b": bias(ks[5], latent),
        "unbneck_w": w(ks[6], (flat, latent), latent), "unbneck_b": bias(ks[7], flat),
        "dec1_w": w(ks[8], (8, 4, 2, 2, 2), 8 * 8), "dec1_b": bias(ks[9], 4),
        "dec2_w": w(ks[10], (4, 1, 2, 2, 2), 4 * 8), "dec2_b": bias(ks[11], 1),
    }


def _reference_forward(params, x):
    h = jnp.maximum(_conv3d(x, params["enc1_w"], params["enc1_b"], 2, 1), 0.0)
    h = jnp.maximum(_conv3d(h, params["enc2_w"], params["enc2_b"], 2, 1), 0.0)
    B = x.shape[0]
    feat_shape = h.shape[1:]
    g = h.reshape(B, -1)
    z = g @ params["bneck_w"].T + params["bneck_b"]
    u = z @ params["unbneck_w"].T + params["unbneck_b"]
    u = u.reshape(B, *feat_shape)
    h = jnp.maximum(_convT3d(u, params["dec1_w"], params["dec1_b"]), 0.0)
    return _convT3d(h, params["dec2_w"], params["dec2_b"])


if __name__ == "__main__":
    key = jax.random.PRNGKey(0)
    pkey, xkey = jax.random.split(key)
    params = init_params(pkey)
    kparams = prepare_params(params, input_shape=(1, 8, 8, 8))

    # x: (B, C, D, H, W) = (16, 1, 8, 8, 8)  -> grid of 2 steps, TB = 8
    x = jax.random.normal(xkey, (16, 1, 8, 8, 8), dtype=jnp.float32)

    x_hat = conv_autoencoder_forward(kparams, x)
    jax.block_until_ready(x_hat)
    assert x_hat.shape == x.shape, (x_hat.shape, x.shape)

    # Correctness check against a pure-JAX f32 reference (bf16 MXU operands
    # with f32 accumulation -> small numerical difference only).
    ref = _reference_forward(params, x)
    max_err = float(jnp.max(jnp.abs(x_hat - ref)))
    assert max_err < 5e-2, f"max abs error vs reference too large: {max_err}"

    print("KERNEL_OK")
</pallas_src>

<mosaic_0001>
module attributes {stable_mosaic.version = 11 : i64} {
  func.func @_fused_forward_kernel(%arg0: i32, %arg1: memref<8x512xf32, #tpu.memory_space<vmem>>, %arg2: memref<512x256xbf16, #tpu.memory_space<vmem>>, %arg3: memref<1x256xf32, #tpu.memory_space<vmem>>, %arg4: memref<256x64xbf16, #tpu.memory_space<vmem>>, %arg5: memref<1x64xf32, #tpu.memory_space<vmem>>, %arg6: memref<64x64xbf16, #tpu.memory_space<vmem>>, %arg7: memref<1x64xf32, #tpu.memory_space<vmem>>, %arg8: memref<64x256xbf16, #tpu.memory_space<vmem>>, %arg9: memref<1x256xf32, #tpu.memory_space<vmem>>, %arg10: memref<256x512xbf16, #tpu.memory_space<vmem>>, %arg11: memref<1x512xf32, #tpu.memory_space<vmem>>, %arg12: memref<8x512xf32, #tpu.memory_space<vmem>>) attributes {dimension_semantics = [#tpu.dimension_semantics<parallel>], iteration_bounds = array<i64: 2>, scalar_prefetch = 0 : i64, scratch_operands = 0 : i64, tpu.core_type = #tpu.core_type<tc>, window_params = [{transform_indices = @transform_0, window_bounds = array<i64: 8, 512>}, {pipeline_mode = #tpu.pipeline_mode<synchronous>, transform_indices = @transform_1, window_bounds = array<i64: 512, 256>}, {pipeline_mode = #tpu.pipeline_mode<synchronous>, transform_indices = @transform_2, window_bounds = array<i64: 1, 256>}, {pipeline_mode = #tpu.pipeline_mode<synchronous>, transform_indices = @transform_3, window_bounds = array<i64: 256, 64>}, {pipeline_mode = #tpu.pipeline_mode<synchronous>, transform_indices = @transform_4, window_bounds = array<i64: 1, 64>}, {pipeline_mode = #tpu.pipeline_mode<synchronous>, transform_indices = @transform_5, window_bounds = array<i64: 64, 64>}, {pipeline_mode = #tpu.pipeline_mode<synchronous>, transform_indices = @transform_6, window_bounds = array<i64: 1, 64>}, {pipeline_mode = #tpu.pipeline_mode<synchronous>, transform_indices = @transform_7, window_bounds = array<i64: 64, 256>}, {pipeline_mode = #tpu.pipeline_mode<synchronous>, transform_indices = @transform_8, window_bounds = array<i64: 1, 256>}, {pipeline_mode = #tpu.pipeline_mode<synchronous>, transform_indices = @transform_9, window_bounds = array<i64: 256, 512>}, {pipeline_mode = #tpu.pipeline_mode<synchronous>, transform_indices = @transform_10, window_bounds = array<i64: 1, 512>}, {transform_indices = @transform_11, window_bounds = array<i64: 8, 512>}]} {
    %c0 = arith.constant 0 : index
    %c0_0 = arith.constant 0 : index
    %0 = vector.load %arg1[%c0, %c0_0] : memref<8x512xf32, #tpu.memory_space<vmem>>, vector<8x512xf32>
    %1 = arith.truncf %0 : vector<8x512xf32> to vector<8x512xbf16>
    %c0_1 = arith.constant 0 : index
    %c0_2 = arith.constant 0 : index
    %2 = vector.load %arg2[%c0_1, %c0_2] : memref<512x256xbf16, #tpu.memory_space<vmem>>, vector<512x256xbf16>
    %cst = arith.constant dense<0.000000e+00> : vector<8x256xf32>
    %3 = tpu.matmul %1, %2, %cst {dimension_numbers = #tpu.dot_dimension_numbers<[1], [0], [0], [1], [0, 0, 1, 1], [], []>} : vector<8x512xbf16>, vector<512x256xbf16>, vector<8x256xf32> -> vector<8x256xf32>
    %c0_3 = arith.constant 0 : index
    %c0_4 = arith.constant 0 : index
    %4 = vector.load %arg3[%c0_3, %c0_4] : memref<1x256xf32, #tpu.memory_space<vmem>>, vector<1x256xf32>
    %5 = vector.broadcast %4 : vector<1x256xf32> to vector<8x256xf32>
    %6 = arith.addf %3, %5 : vector<8x256xf32>
    %cst_5 = arith.constant 0.000000e+00 : f32
    %7 = vector.broadcast %cst_5 : f32 to vector<8x256xf32>
    %8 = arith.maximumf %6, %7 : vector<8x256xf32>
    %9 = arith.truncf %8 : vector<8x256xf32> to vector<8x256xbf16>
    %c0_6 = arith.constant 0 : index
    %c0_7 = arith.constant 0 : index
    %10 = vector.load %arg4[%c0_6, %c0_7] : memref<256x64xbf16, #tpu.memory_space<vmem>>, vector<256x64xbf16>
    %cst_8 = arith.constant dense<0.000000e+00> : vector<8x64xf32>
    %11 = tpu.matmul %9, %10, %cst_8 {dimension_numbers = #tpu.dot_dimension_numbers<[1], [0], [0], [1], [0, 0, 1, 1], [], []>} : vector<8x256xbf16>, vector<256x64xbf16>, vector<8x64xf32> -> vector<8x64xf32>
    %c0_9 = arith.constant 0 : index
    %c0_10 = arith.constant 0 : index
    %12 = vector.load %arg5[%c0_9, %c0_10] : memref<1x64xf32, #tpu.memory_space<vmem>>, vector<1x64xf32>
    %13 = vector.broadcast %12 : vector<1x64xf32> to vector<8x64xf32>
    %14 = arith.addf %11, %13 : vector<8x64xf32>
    %cst_11 = arith.constant 0.000000e+00 : f32
    %15 = vector.broadcast %cst_11 : f32 to vector<8x64xf32>
    %16 = arith.maximumf %14, %15 : vector<8x64xf32>
    %17 = arith.truncf %16 : vector<8x64xf32> to vector<8x64xbf16>
    %c0_12 = arith.constant 0 : index
    %c0_13 = arith.constant 0 : index
    %18 = vector.load %arg6[%c0_12, %c0_13] : memref<64x64xbf16, #tpu.memory_space<vmem>>, vector<64x64xbf16>
    %cst_14 = arith.constant dense<0.000000e+00> : vector<8x64xf32>
    %19 = tpu.matmul %17, %18, %cst_14 {dimension_numbers = #tpu.dot_dimension_numbers<[1], [0], [0], [1], [0, 0, 1, 1], [], []>} : vector<8x64xbf16>, vector<64x64xbf16>, vector<8x64xf32> -> vector<8x64xf32>
    %c0_15 = arith.constant 0 : index
    %c0_16 = arith.constant 0 : index
    %20 = vector.load %arg7[%c0_15, %c0_16] : memref<1x64xf32, #tpu.memory_space<vmem>>, vector<1x64xf32>
    %21 = vector.broadcast %20 : vector<1x64xf32> to vector<8x64xf32>
    %22 = arith.addf %19, %21 : vector<8x64xf32>
    %23 = arith.truncf %22 : vector<8x64xf32> to vector<8x64xbf16>
    %c0_17 = arith.constant 0 : index
    %c0_18 = arith.constant 0 : index
    %24 = vector.load %arg8[%c0_17, %c0_18] : memref<64x256xbf16, #tpu.memory_space<vmem>>, vector<64x256xbf16>
    %cst_19 = arith.constant dense<0.000000e+00> : vector<8x256xf32>
    %25 = tpu.matmul %23, %24, %cst_19 {dimension_numbers = #tpu.dot_dimension_numbers<[1], [0], [0], [1], [0, 0, 1, 1], [], []>} : vector<8x64xbf16>, vector<64x256xbf16>, vector<8x256xf32> -> vector<8x256xf32>
    %c0_20 = arith.constant 0 : index
    %c0_21 = arith.constant 0 : index
    %26 = vector.load %arg9[%c0_20, %c0_21] : memref<1x256xf32, #tpu.memory_space<vmem>>, vector<1x256xf32>
    %27 = vector.broadcast %26 : vector<1x256xf32> to vector<8x256xf32>
    %28 = arith.addf %25, %27 : vector<8x256xf32>
    %cst_22 = arith.constant 0.000000e+00 : f32
    %29 = vector.broadcast %cst_22 : f32 to vector<8x256xf32>
    %30 = arith.maximumf %28, %29 : vector<8x256xf32>
    %31 = arith.truncf %30 : vector<8x256xf32> to vector<8x256xbf16>
    %c0_23 = arith.constant 0 : index
    %c0_24 = arith.constant 0 : index
    %32 = vector.load %arg10[%c0_23, %c0_24] : memref<256x512xbf16, #tpu.memory_space<vmem>>, vector<256x512xbf16>
    %cst_25 = arith.constant dense<0.000000e+00> : vector<8x512xf32>
    %33 = tpu.matmul %31, %32, %cst_25 {dimension_numbers = #tpu.dot_dimension_numbers<[1], [0], [0], [1], [0, 0, 1, 1], [], []>} : vector<8x256xbf16>, vector<256x512xbf16>, vector<8x512xf32> -> vector<8x512xf32>
    %c0_26 = arith.constant 0 : index
    %c0_27 = arith.constant 0 : index
    %34 = vector.load %arg11[%c0_26, %c0_27] : memref<1x512xf32, #tpu.memory_space<vmem>>, vector<1x512xf32>
    %35 = vector.broadcast %34 : vector<1x512xf32> to vector<8x512xf32>
    %36 = arith.addf %33, %35 : vector<8x512xf32>
    %c0_28 = arith.constant 0 : index
    %c0_29 = arith.constant 0 : index
    %37 = vector.load %arg12[%c0_28, %c0_29] : memref<8x512xf32, #tpu.memory_space<vmem>>, vector<8x512xf32>
    tpu.vector_store %arg12[%c0_28, %c0_29], %36 {strides = array<i32>} : memref<8x512xf32, #tpu.memory_space<vmem>>, vector<8x512xf32>,
    return
  }
  func.func @transform_0(%arg0: i32) -> (i32, i32) {
    %c0_i32 = arith.constant 0 : i32
    %c0_i32_0 = arith.constant 0 : i32
    return %arg0, %c0_i32 : i32, i32
  }
  func.func @transform_1(%arg0: i32) -> (i32, i32) {
    %c0_i32 = arith.constant 0 : i32
    %c0_i32_0 = arith.constant 0 : i32
    %c0_i32_1 = arith.constant 0 : i32
    return %c0_i32, %c0_i32_0 : i32, i32
  }
  func.func @transform_2(%arg0: i32) -> (i32, i32) {
    %c0_i32 = arith.constant 0 : i32
    %c0_i32_0 = arith.constant 0 : i32
    %c0_i32_1 = arith.constant 0 : i32
    return %c0_i32, %c0_i32_0 : i32, i32
  }
  func.func @transform_3(%arg0: i32) -> (i32, i32) {
    %c0_i32 = arith.constant 0 : i32
    %c0_i32_0 = arith.constant 0 : i32
    %c0_i32_1 = arith.constant 0 : i32
    return %c0_i32, %c0_i32_0 : i32, i32
  }
  func.func @transform_4(%arg0: i32) -> (i32, i32) {
    %c0_i32 = arith.constant 0 : i32
    %c0_i32_0 = arith.constant 0 : i32
    %c0_i32_1 = arith.constant 0 : i32
    return %c0_i32, %c0_i32_0 : i32, i32
  }
  func.func @transform_5(%arg0: i32) -> (i32, i32) {
    %c0_i32 = arith.constant 0 : i32
    %c0_i32_0 = arith.constant 0 : i32
    %c0_i32_1 = arith.constant 0 : i32
    return %c0_i32, %c0_i32_0 : i32, i32
  }
  func.func @transform_6(%arg0: i32) -> (i32, i32) {
    %c0_i32 = arith.constant 0 : i32
    %c0_i32_0 = arith.constant 0 : i32
    %c0_i32_1 = arith.constant 0 : i32
    return %c0_i32, %c0_i32_0 : i32, i32
  }
  func.func @transform_7(%arg0: i32) -> (i32, i32) {
    %c0_i32 = arith.constant 0 : i32
    %c0_i32_0 = arith.constant 0 : i32
    %c0_i32_1 = arith.constant 0 : i32
    return %c0_i32, %c0_i32_0 : i32, i32
  }
  func.func @transform_8(%arg0: i32) -> (i32, i32) {
    %c0_i32 = arith.constant 0 : i32
    %c0_i32_0 = arith.constant 0 : i32
    %c0_i32_1 = arith.constant 0 : i32
    return %c0_i32, %c0_i32_0 : i32, i32
  }
  func.func @transform_9(%arg0: i32) -> (i32, i32) {
    %c0_i32 = arith.constant 0 : i32
    %c0_i32_0 = arith.constant 0 : i32
    %c0_i32_1 = arith.constant 0 : i32
    return %c0_i32, %c0_i32_0 : i32, i32
  }
  func.func @transform_10(%arg0: i32) -> (i32, i32) {
    %c0_i32 = arith.constant 0 : i32
    %c0_i32_0 = arith.constant 0 : i32
    %c0_i32_1 = arith.constant 0 : i32
    return %c0_i32, %c0_i32_0 : i32, i32
  }
  func.func @transform_11(%arg0: i32) -> (i32, i32) {
    %c0_i32 = arith.constant 0 : i32
    %c0_i32_0 = arith.constant 0 : i32
    return %arg0, %c0_i32 : i32, i32
  }
}

</mosaic_0001>

<bundles_post_ra>
// kernel: conv_autoencoder_forward.1
= control target key start
LH: loop header
LB: loop body
LE: loop exit
PB: predicated region body
PF: predicated region fallthrough
CT: control target
= control target key end

     0   :  { %16 = vsyncpa [#allocation3], 0  ;;  %s2707_s17 = smov 0   ;;  %s3267_s0 = inlined_call_operand.vmem [shape: f32[16,512], index: 0, kind: input, shape index: {}]   ;;  %s3268_s1 = inlined_call_operand.vmem [shape: bf16[512,256], index: 1, kind: input, shape index: {}]   ;;  %s3269_s2 = inlined_call_operand.vmem [shape: f32[1,256], index: 2, kind: input, shape index: {}]   ;;  %s3270_s3 = inlined_call_operand.vmem [shape: bf16[256,64], index: 3, kind: input, shape index: {}]   ;;  %s3271_s4 = inlined_call_operand.vmem [shape: f32[1,64], index: 4, kind: input, shape index: {}]   ;;  %s3272_s5 = inlined_call_operand.vmem [shape: bf16[64,64], index: 5, kind: input, shape index: {}]   ;;  %s3273_s6 = inlined_call_operand.vmem [shape: f32[1,64], index: 6, kind: input, shape index: {}]   ;;  %s3274_s7 = inlined_call_operand.vmem [shape: bf16[64,256], index: 7, kind: input, shape index: {}]   ;;  %s3275_s8 = inlined_call_operand.vmem [shape: f32[1,256], index: 8, kind: input, shape index: {}]   ;;  %s3276_s9 = inlined_call_operand.hbm [shape: bf16[256,512], index: 9, kind: input, shape index: {}]   ;;  %s3277_s10 = inlined_call_operand.vmem [shape: f32[1,512], index: 10, kind: input, shape index: {}]   ;;  %s3278_s11 = inlined_call_operand.vmem [shape: f32[16,512], index: 11, kind: output, shape index: {}]  }
   0x1 LB: > { %s324_s20 = sshll.u32 %s3276_s9, 4  ;;  %s2716_s21 = sadd.s32 4294967295, %s2642_s17   ;;  %s2642_s17 = sphi %s2707_s17, %s22_s17   ;;  %s325_s20 = int_to_ptr.hbm [resolvable:$true] %s324_s20 }
   0x2   : > { %p1783_p0 = scmp.ge.s32.totalorder %s2642_s17, 1  ;;  %p289_p1 = scmp.lt.s32.totalorder %s2642_s17, 3 }
   0x3   : > { %p2587_p2 = scmp.eq.s32.totalorder %s2716_s21, 0  ;;  %s2644_s22 = smov [#allocation2]  }
   0x4   : > { %p290_p3 = pnand %p1783_p0, %p289_p1  ;;  %s326_s23 = sshll.u32 %s2644_s22, 4  ;;  %s327_s23 = int_to_ptr.vmem [resolvable:$true] %s326_s23 }
   0x5   : > { %s2645_s24 = smov 256   ;;  %s2646_s25 = smov 16  }
   0x6   : > { %p2583_p4 = pneg %p290_p3  ;;  %353 = sbr.rel (%p290_p3) target bundleno = 783 (0x30f), region = 64 }
   0x8   : > { %p2584_p5 = pnand %p2587_p2, %p2583_p4 }
   0xa   : > { %2586 = dma.hbm_to_vmem [thread:$0]  (!%p2584_p5), %s325_s20, 8192, %s327_s23, [#allocation3], %s2645_s24, %s2645_s24, %s2646_s25  }
   0xb   : > { %2637 = dma.done.wait (%p2587_p2), [#allocation3], 8192  }
   0xc   : > { %2639 = vsyncadd (%p2587_p2), [#allocation3], 4294959104  ;;  %v1850_v0 = vld [vmem:[%s3268_s1 + $0x70] sm:$0xf]  ;;  %v2438_v1 = vld [vmem:[%s3268_s1 + $0x74] sm:$0xf0] }
   0xd   : > { %v1914_v2 = vld [vmem:[%s3268_s1 + $0xf0] sm:$0xf]  ;;  %v1851_v3 = vor.u32 %v2438_v1, %v1850_v0  ;;  %v2454_v4 = vld [vmem:[%s3268_s1 + $0xf4] sm:$0xf0]  ;;  %v1842_v11 = vld [vmem:[%s3268_s1 + $0x60] sm:$0xf] }
   0xe   : > { %v1978_v5 = vld [vmem:[%s3268_s1 + $0x170] sm:$0xf]  ;;  %v2470_v6 = vld [vmem:[%s3268_s1 + $0x174] sm:$0xf0]  ;;  %v1915_v7 = vor.u32 %v2454_v4, %v1914_v2  ;;  %v2436_v13 = vld [vmem:[%s3268_s1 + $0x64] sm:$0xf0] }
   0xf   : > { %v1979_v8 = vor.u32 %v2470_v6, %v1978_v5  ;;  %v2042_v9 = vld [vmem:[%s3268_s1 + $0x1f0] sm:$0xf]  ;;  %v2486_v10 = vld [vmem:[%s3268_s1 + $0x1f4] sm:$0xf0]  ;;  %803 = vmatpush.bf16.msra.mxu0 %v1851_v3  ;;  %v1906_v14 = vld [vmem:[%s3268_s1 + $0xe0] sm:$0xf]  ;;  %v1843_v16 = vor.u32 %v2436_v13, %v1842_v11 }
  0x10   : > { %v2043_v12 = vor.u32 %v2486_v10, %v2042_v9  ;;  %v2452_v15 = vld [vmem:[%s3268_s1 + $0xe4] sm:$0xf0]  ;;  %816 = vmatpush.bf16.msra.mxu1 %v1915_v7  ;;  %v1970_v18 = vld [vmem:[%s3268_s1 + $0x160] sm:$0xf]  ;;  %v1834_v23 = vld [vmem:[%s3268_s1 + $0x50] sm:$0xf] }
  0x11   : > { %829 = vmatpush.bf16.msra.mxu2 %v1979_v8  ;;  %v1907_v17 = vor.u32 %v2452_v15, %v1906_v14  ;;  %v2468_v19 = vld [vmem:[%s3268_s1 + $0x164] sm:$0xf0]  ;;  %v2034_v20 = vld [vmem:[%s3268_s1 + $0x1e0] sm:$0xf]  ;;  %v2434_v24 = vld [vmem:[%s3268_s1 + $0x54] sm:$0xf0] }
  0x12   : > { %842 = vmatpush.bf16.msra.mxu3 %v2043_v12  ;;  %v1971_v21 = vor.u32 %v2468_v19, %v1970_v18  ;;  %v2484_v22 = vld [vmem:[%s3268_s1 + $0x1e4] sm:$0xf0]  ;;  %v1898_v26 = vld [vmem:[%s3268_s1 + $0xd0] sm:$0xf]  ;;  %v2450_v27 = vld [vmem:[%s3268_s1 + $0xd4] sm:$0xf0]  ;;  %v1835_v29 = vor.u32 %v2434_v24, %v1834_v23 }
  0x13   : > { %v2035_v25 = vor.u32 %v2484_v22, %v2034_v20  ;;  %v1962_v28 = vld [vmem:[%s3268_s1 + $0x150] sm:$0xf]  ;;  %804 = vmatpush.bf16.msra.mxu0 %v1843_v16  ;;  %v2466_v30 = vld [vmem:[%s3268_s1 + $0x154] sm:$0xf0]  ;;  %v1899_v33 = vor.u32 %v2450_v27, %v1898_v26  ;;  %v1826_v35 = vld [vmem:[%s3268_s1 + $0x40] sm:$0xf] }
  0x14   : > { %v2026_v31 = vld [vmem:[%s3268_s1 + $0x1d0] sm:$0xf]  ;;  %v2482_v32 = vld [vmem:[%s3268_s1 + $0x1d4] sm:$0xf0]  ;;  %817 = vmatpush.bf16.msra.mxu1 %v1907_v17  ;;  %v1963_v34 = vor.u32 %v2466_v30, %v1962_v28  ;;  %v2432_v36 = vld [vmem:[%s3268_s1 + $0x44] sm:$0xf0] }
  0x15   : > { %830 = vmatpush.bf16.msra.mxu2 %v1971_v21  ;;  %v1890_v37 = vld [vmem:[%s3268_s1 + $0xc0] sm:$0xf]  ;;  %v2027_v38 = vor.u32 %v2482_v32, %v2026_v31  ;;  %v2448_v39 = vld [vmem:[%s3268_s1 + $0xc4] sm:$0xf0]  ;;  %v1827_v44 = vor.u32 %v2432_v36, %v1826_v35  ;;  %v1818_v47 = vld [vmem:[%s3268_s1 + $0x30] sm:$0xf] }
  0x16   : > { %843 = vmatpush.bf16.msra.mxu3 %v2035_v25  ;;  %v1954_v40 = vld [vmem:[%s3268_s1 + $0x140] sm:$0xf]  ;;  %v2464_v41 = vld [vmem:[%s3268_s1 + $0x144] sm:$0xf0]  ;;  %v1891_v45 = vor.u32 %v2448_v39, %v1890_v37  ;;  %v2430_v48 = vld [vmem:[%s3268_s1 + $0x34] sm:$0xf0] }
  0x17   : > { %v2018_v42 = vld [vmem:[%s3268_s1 + $0x1c0] sm:$0xf]  ;;  %v2480_v43 = vld [vmem:[%s3268_s1 + $0x1c4] sm:$0xf0]  ;;  %805 = vmatpush.bf16.msra.mxu0 %v1835_v29  ;;  %v1955_v46 = vor.u32 %v2464_v41, %v1954_v40  ;;  %v1882_v49 = vld [vmem:[%s3268_s1 + $0xb0] sm:$0xf]  ;;  %v1819_v56 = vor.u32 %v2430_v48, %v1818_v47 }
  0x18   : > { %818 = vmatpush.bf16.msra.mxu1 %v1899_v33  ;;  %v2019_v50 = vor.u32 %v2480_v43, %v2018_v42  ;;  %v2446_v51 = vld [vmem:[%s3268_s1 + $0xb4] sm:$0xf0]  ;;  %v1946_v52 = vld [vmem:[%s3268_s1 + $0x130] sm:$0xf]  ;;  %p394_p6 = scmp.lt.s32.totalorder %s2716_s21, 1  ;;  %vm1107_vm0 = vcmask 523264  }
  0x19   : > { %831 = vmatpush.bf16.msra.mxu2 %v1963_v34  ;;  %v2462_v53 = vld [vmem:[%s3268_s1 + $0x134] sm:$0xf0]  ;;  %v2010_v54 = vld [vmem:[%s3268_s1 + $0x1b0] sm:$0xf]  ;;  %v1883_v57 = vor.u32 %v2446_v51, %v1882_v49  ;;  %v1810_v59 = vld [vmem:[%s3268_s1 + $0x20] sm:$0xf] }
  0x1a   : > { %844 = vmatpush.bf16.msra.mxu3 %v2027_v38  ;;  %v2478_v55 = vld [vmem:[%s3268_s1 + $0x1b4] sm:$0xf0]  ;;  %v1947_v58 = vor.u32 %v2462_v53, %v1946_v52  ;;  %v2428_v60 = vld [vmem:[%s3268_s1 + $0x24] sm:$0xf0]  ;;  %v1874_v61 = vld [vmem:[%s3268_s1 + $0xa0] sm:$0xf] }
  0x1b   : > { %806 = vmatpush.bf16.msra.mxu0 %v1827_v44  ;;  %v2011_v62 = vor.u32 %v2478_v55, %v2010_v54  ;;  %v2444_v63 = vld [vmem:[%s3268_s1 + $0xa4] sm:$0xf0]  ;;  %v1938_v0 = vld [vmem:[%s3268_s1 + $0x120] sm:$0xf]  ;;  %s3280_s21 = smov (!%p394_p6, %s2716_s21), 1  ;;  %v1811_v4 = vor.u32 %v2428_v60, %v1810_v59 }
  0x1c   : > { %819 = vmatpush.bf16.msra.mxu1 %v1891_v45  ;;  %v2460_v1 = vld [vmem:[%s3268_s1 + $0x124] sm:$0xf0]  ;;  %v2002_v2 = vld [vmem:[%s3268_s1 + $0x1a0] sm:$0xf]  ;;  %v1875_v5 = vor.u32 %v2444_v63, %v1874_v61  ;;  %v1802_v7 = vld [vmem:[%s3268_s1 + $0x10] sm:$0xf] }
  0x1d   : > { %832 = vmatpush.bf16.msra.mxu2 %v1955_v46  ;;  %v2476_v3 = vld [vmem:[%s3268_s1 + $0x1a4] sm:$0xf0]  ;;  %v1939_v6 = vor.u32 %v2460_v1, %v1938_v0  ;;  %v2426_v8 = vld [vmem:[%s3268_s1 + $0x14] sm:$0xf0]  ;;  %v1866_v9 = vld [vmem:[%s3268_s1 + $0x90] sm:$0xf] }
  0x1e   : > { %845 = vmatpush.bf16.msra.mxu3 %v2019_v50  ;;  %v2003_v10 = vor.u32 %v2476_v3, %v2002_v2  ;;  %v2442_v11 = vld [vmem:[%s3268_s1 + $0x94] sm:$0xf0]  ;;  %v1930_v12 = vld [vmem:[%s3268_s1 + $0x110] sm:$0xf]  ;;  %s2421_s18 = sshll.u32 %s3280_s21, 5  ;;  %v1803_v16 = vor.u32 %v2426_v8, %v1802_v7 }
  0x1f   : > { %807 = vmatpush.bf16.msra.mxu0 %v1819_v56  ;;  %v2458_v13 = vld [vmem:[%s3268_s1 + $0x114] sm:$0xf0]  ;;  %v1994_v14 = vld [vmem:[%s3268_s1 + $0x190] sm:$0xf]  ;;  %v1794_v17 = vld [vmem:[%s3268_s1] sm:$0xf]  ;;  %v1867_v19 = vor.u32 %v2442_v11, %v1866_v9  ;;  %s398_s22 = scalar_lea.vmem %s3267_s0, %s2421_s18  ;;  %s403_s28 = scalar_lea.vmem %s3278_s11, %s2421_s18 }
  0x20   : > { %820 = vmatpush.bf16.msra.mxu1 %v1883_v57  ;;  %v2474_v15 = vld [vmem:[%s3268_s1 + $0x194] sm:$0xf0]  ;;  %v2424_v18 = vld [vmem:[%s3268_s1 + $0x4] sm:$0xf0]  ;;  %v1931_v20 = vor.u32 %v2458_v13, %v1930_v12  ;;  %v1858_v21 = vld [vmem:[%s3268_s1 + $0x80] sm:$0xf] }
  0x21   : > { %833 = vmatpush.bf16.msra.mxu2 %v1947_v58  ;;  %v2440_v22 = vld [vmem:[%s3268_s1 + $0x84] sm:$0xf0]  ;;  %v1922_v23 = vld [vmem:[%s3268_s1 + $0x100] sm:$0xf]  ;;  %v1995_v24 = vor.u32 %v2474_v15, %v1994_v14  ;;  %v2437_v28 = vld [vmem:[%s3268_s1 + $0x74] sm:$0xf]  ;;  %v1795_v31 = vor.u32 %v2424_v18, %v1794_v17 }
  0x22   : > { %846 = vmatpush.bf16.msra.mxu3 %v2011_v62  ;;  %v2456_v25 = vld [vmem:[%s3268_s1 + $0x104] sm:$0xf0]  ;;  %v1986_v26 = vld [vmem:[%s3268_s1 + $0x180] sm:$0xf]  ;;  %v1852_v29 = vld [vmem:[%s3268_s1 + $0x78] sm:$0xf0]  ;;  %v1859_v35 = vor.u32 %v2440_v22, %v1858_v21 }
  0x23   : > { %808 = vmatpush.bf16.msra.mxu0 %v1811_v4  ;;  %v2472_v27 = vld [vmem:[%s3268_s1 + $0x184] sm:$0xf0]  ;;  %v2453_v30 = vld [vmem:[%s3268_s1 + $0xf4] sm:$0xf]  ;;  %v1916_v32 = vld [vmem:[%s3268_s1 + $0xf8] sm:$0xf0]  ;;  %v1923_v36 = vor.u32 %v2456_v25, %v1922_v23  ;;  %v1855_v41 = vor.u32 %v2437_v28, %v1852_v29 }
  0x24   : > { %821 = vmatpush.bf16.msra.mxu1 %v1875_v5  ;;  %v2469_v33 = vld [vmem:[%s3268_s1 + $0x174] sm:$0xf]  ;;  %v1980_v34 = vld [vmem:[%s3268_s1 + $0x178] sm:$0xf0]  ;;  %v1987_v40 = vor.u32 %v2472_v27, %v1986_v26  ;;  %v2435_v42 = vld [vmem:[%s3268_s1 + $0x64] sm:$0xf]  ;;  %v1919_v45 = vor.u32 %v2453_v30, %v1916_v32 }
  0x25   : > { %834 = vmatpush.bf16.msra.mxu2 %v1939_v6  ;;  %v2485_v37 = vld [vmem:[%s3268_s1 + $0x1f4] sm:$0xf]  ;;  %v2044_v38 = vld [vmem:[%s3268_s1 + $0x1f8] sm:$0xf0]  ;;  %v1844_v43 = vld [vmem:[%s3268_s1 + $0x68] sm:$0xf0]  ;;  %v1983_v46 = vor.u32 %v2469_v33, %v1980_v34 }
  0x26   : > { %847 = vmatpush.bf16.msra.mxu3 %v2003_v10  ;;  %v407_v39 = vld [vmem:[%s398_s22 + $0x10] sm:$0xff]  ;;  %v405_v44 = vld [vmem:[%s398_s22] sm:$0xff]  ;;  %v408_v48 = vld [vmem:[%s398_s22 + $0x18] sm:$0xff]  ;;  %v2047_v50 = vor.u32 %v2485_v37, %v2044_v38  ;;  %v1847_v59 = vor.u32 %v2435_v42, %v1844_v43 }
  0x27   : > { %809 = vmatpush.bf16.msra.mxu0 %v1803_v16  ;;  %v2451_v47 = vld [vmem:[%s3268_s1 + $0xe4] sm:$0xf]  ;;  %v406_v49 = vld [vmem:[%s398_s22 + $0x8] sm:$0xff]  ;;  %v2967_v54 = vpack.c.bf16 %v407_v39, %v407_v39  ;;  %v2975_v57 = vpack.c.bf16 %v405_v44, %v405_v44  ;;  %v2977_v58 = vpack.c.bf16 %v408_v48, %v408_v48  ;;  %v2433_v63 = vld [vmem:[%s3268_s1 + $0x54] sm:$0xf] }
  0x28   : > { %822 = vmatpush.bf16.msra.mxu1 %v1867_v19  ;;  %v1908_v51 = vld [vmem:[%s3268_s1 + $0xe8] sm:$0xf0]  ;;  %v2467_v52 = vld [vmem:[%s3268_s1 + $0x164] sm:$0xf]  ;;  %v2979_v60 = vpack.c.bf16 %v406_v49, %v406_v49  ;;  %v1836_v0 = vld [vmem:[%s3268_s1 + $0x58] sm:$0xf0] }
  0x29   : > { %835 = vmatpush.bf16.msra.mxu2 %v1931_v20  ;;  %v1972_v53 = vld [vmem:[%s3268_s1 + $0x168] sm:$0xf0]  ;;  %v2483_v55 = vld [vmem:[%s3268_s1 + $0x1e4] sm:$0xf]  ;;  %v1911_v61 = vor.u32 %v2451_v47, %v1908_v51  ;;  %v2449_v1 = vld [vmem:[%s3268_s1 + $0xd4] sm:$0xf]  ;;  %v1839_v8 = vor.u32 %v2433_v63, %v1836_v0 }
  0x2a   : > { %848 = vmatpush.bf16.msra.mxu3 %v1995_v24  ;;  %v2036_v56 = vld [vmem:[%s3268_s1 + $0x1e8] sm:$0xf0]  ;;  %v1975_v62 = vor.u32 %v2467_v52, %v1972_v53  ;;  %v1900_v3 = vld [vmem:[%s3268_s1 + $0xd8] sm:$0xf0]  ;;  %v2465_v4 = vld [vmem:[%s3268_s1 + $0x154] sm:$0xf] }
  0x2b   : > { %810 = vmatpush.bf16.msra.mxu0 %v1795_v31  ;;  %v2039_v2 = vor.u32 %v2483_v55, %v2036_v56  ;;  %v1964_v5 = vld [vmem:[%s3268_s1 + $0x158] sm:$0xf0]  ;;  %v2481_v6 = vld [vmem:[%s3268_s1 + $0x1d4] sm:$0xf]  ;;  %v1903_v9 = vor.u32 %v2449_v1, %v1900_v3  ;;  %v2431_v11 = vld [vmem:[%s3268_s1 + $0x44] sm:$0xf] }
  0x2c   : > { %823 = vmatpush.bf16.msra.mxu1 %v1859_v35  ;;  %v2028_v7 = vld [vmem:[%s3268_s1 + $0x1d8] sm:$0xf0]  ;;  %v1967_v10 = vor.u32 %v2465_v4, %v1964_v5  ;;  %v1828_v12 = vld [vmem:[%s3268_s1 + $0x48] sm:$0xf0]  ;;  %v2447_v13 = vld [vmem:[%s3268_s1 + $0xc4] sm:$0xf] }
  0x2d   : > { %836 = vmatpush.bf16.msra.mxu2 %v1923_v36  ;;  %v2031_v14 = vor.u32 %v2481_v6, %v2028_v7  ;;  %v1892_v15 = vld [vmem:[%s3268_s1 + $0xc8] sm:$0xf0]  ;;  %v2463_v16 = vld [vmem:[%s3268_s1 + $0x144] sm:$0xf]  ;;  %v1831_v20 = vor.u32 %v2431_v11, %v1828_v12  ;;  %v2429_v23 = vld [vmem:[%s3268_s1 + $0x34] sm:$0xf] }
  0x2e   : > { %849 = vmatpush.bf16.msra.mxu3 %v1987_v40  ;;  %811 = vmatmul.bf16.vlgmr.msra.gmra.mxu0 %v2975_v57  ;;  %v1956_v17 = vld [vmem:[%s3268_s1 + $0x148] sm:$0xf0]  ;;  %v2479_v18 = vld [vmem:[%s3268_s1 + $0x1c4] sm:$0xf]  ;;  %v1895_v21 = vor.u32 %v2447_v13, %v1892_v15  ;;  %v1820_v24 = vld [vmem:[%s3268_s1 + $0x38] sm:$0xf0] }
  0x2f   : > { %855 = vmatpush.bf16.msrb.mxu0 %v1855_v41  ;;  %824 = vmatmul.bf16.vlgmr.msra.gmra.mxu1 %v2979_v60  ;;  %v2020_v19 = vld [vmem:[%s3268_s1 + $0x1c8] sm:$0xf0]  ;;  %v1959_v22 = vor.u32 %v2463_v16, %v1956_v17  ;;  %v2445_v25 = vld [vmem:[%s3268_s1 + $0xb4] sm:$0xf]  ;;  %v1884_v27 = vld [vmem:[%s3268_s1 + $0xb8] sm:$0xf0]  ;;  %v1823_v32 = vor.u32 %v2429_v23, %v1820_v24 }
  0x30   : > { %868 = vmatpush.bf16.msrb.mxu1 %v1919_v45  ;;  %837 = vmatmul.bf16.vlgmr.msra.gmra.mxu2 %v2967_v54  ;;  %v2023_v26 = vor.u32 %v2479_v18, %v2020_v19  ;;  %v2461_v28 = vld [vmem:[%s3268_s1 + $0x134] sm:$0xf]  ;;  %v1948_v29 = vld [vmem:[%s3268_s1 + $0x138] sm:$0xf0]  ;;  %v2427_v33 = vld [vmem:[%s3268_s1 + $0x24] sm:$0xf]  ;;  %v1887_v34 = vor.u32 %v2445_v25, %v1884_v27 }
  0x31   : > { %881 = vmatpush.bf16.msrb.mxu2 %v1983_v46  ;;  %850 = vmatmul.bf16.vlgmr.msra.gmra.mxu3 %v2977_v58  ;;  %v2477_v30 = vld [vmem:[%s3268_s1 + $0x1b4] sm:$0xf]  ;;  %v2012_v31 = vld [vmem:[%s3268_s1 + $0x1b8] sm:$0xf0]  ;;  %v1951_v35 = vor.u32 %v2461_v28, %v1948_v29  ;;  %v1812_v36 = vld [vmem:[%s3268_s1 + $0x28] sm:$0xf0] }
  0x32   : > { %894 = vmatpush.bf16.msrb.mxu3 %v2047_v50  ;;  %v2443_v37 = vld [vmem:[%s3268_s1 + $0xa4] sm:$0xf]  ;;  %v2015_v38 = vor.u32 %v2477_v30, %v2012_v31  ;;  %v1876_v39 = vld [vmem:[%s3268_s1 + $0xa8] sm:$0xf0]  ;;  %v1815_v44 = vor.u32 %v2427_v33, %v1812_v36  ;;  %v2425_v47 = vld [vmem:[%s3268_s1 + $0x14] sm:$0xf] }
  0x33   : > { %856 = vmatpush.bf16.msrb.mxu0 %v1847_v59  ;;  %v2459_v40 = vld [vmem:[%s3268_s1 + $0x124] sm:$0xf]  ;;  %v1940_v41 = vld [vmem:[%s3268_s1 + $0x128] sm:$0xf0]  ;;  %v1879_v45 = vor.u32 %v2443_v37, %v1876_v39  ;;  %v1804_v48 = vld [vmem:[%s3268_s1 + $0x18] sm:$0xf0] }
  0x34   : > { %869 = vmatpush.bf16.msrb.mxu1 %v1911_v61  ;;  %v2475_v42 = vld [vmem:[%s3268_s1 + $0x1a4] sm:$0xf]  ;;  %v2004_v43 = vld [vmem:[%s3268_s1 + $0x1a8] sm:$0xf0]  ;;  %v1943_v46 = vor.u32 %v2459_v40, %v1940_v41  ;;  %v2441_v49 = vld [vmem:[%s3268_s1 + $0x94] sm:$0xf]  ;;  %v1807_v59 = vor.u32 %v2425_v47, %v1804_v48 }
  0x35   : > { %882 = vmatpush.bf16.msrb.mxu2 %v1975_v62  ;;  %v2007_v50 = vor.u32 %v2475_v42, %v2004_v43  ;;  %v1868_v51 = vld [vmem:[%s3268_s1 + $0x98] sm:$0xf0]  ;;  %v2457_v52 = vld [vmem:[%s3268_s1 + $0x114] sm:$0xf]  ;;  %v2423_v63 = vld [vmem:[%s3268_s1 + $0x4] sm:$0xf] }
  0x36   : > { %895 = vmatpush.bf16.msrb.mxu3 %v2039_v2  ;;  %v1932_v53 = vld [vmem:[%s3268_s1 + $0x118] sm:$0xf0]  ;;  %v2473_v55 = vld [vmem:[%s3268_s1 + $0x194] sm:$0xf]  ;;  %v1871_v61 = vor.u32 %v2441_v49, %v1868_v51  ;;  %v1796_v0 = vld [vmem:[%s3268_s1 + $0x8] sm:$0xf0] }
  0x37   : > { %857 = vmatpush.bf16.msrb.mxu0 %v1839_v8  ;;  %v1996_v56 = vld [vmem:[%s3268_s1 + $0x198] sm:$0xf0]  ;;  %v1935_v62 = vor.u32 %v2457_v52, %v1932_v53  ;;  %v2439_v1 = vld [vmem:[%s3268_s1 + $0x84] sm:$0xf]  ;;  %v1860_v3 = vld [vmem:[%s3268_s1 + $0x88] sm:$0xf0]  ;;  %v1799_v8 = vor.u32 %v2423_v63, %v1796_v0 }
  0x38   : > { %870 = vmatpush.bf16.msrb.mxu1 %v1903_v9  ;;  %v1999_v2 = vor.u32 %v2473_v55, %v1996_v56  ;;  %v2455_v4 = vld [vmem:[%s3268_s1 + $0x104] sm:$0xf]  ;;  %v1924_v5 = vld [vmem:[%s3268_s1 + $0x108] sm:$0xf0]  ;;  %v1863_v9 = vor.u32 %v2439_v1, %v1860_v3  ;;  %v2494_v12 = vld [vmem:[%s3270_s3 + $0x38] sm:$0xff] }
  0x39   : > { %883 = vmatpush.bf16.msrb.mxu2 %v1967_v10  ;;  %v2471_v6 = vld [vmem:[%s3268_s1 + $0x184] sm:$0xf]  ;;  %v1988_v7 = vld [vmem:[%s3268_s1 + $0x188] sm:$0xf0]  ;;  %v1927_v10 = vor.u32 %v2455_v4, %v1924_v5  ;;  %v2493_v13 = vld [vmem:[%s3270_s3 + $0x30] sm:$0xff] }
  0x3a   : > { %896 = vmatpush.bf16.msrb.mxu3 %v2031_v14  ;;  %v1991_v11 = vor.u32 %v2471_v6, %v1988_v7  ;;  %v2492_v14 = vld [vmem:[%s3270_s3 + $0x28] sm:$0xff]  ;;  %v2491_v15 = vld [vmem:[%s3270_s3 + $0x20] sm:$0xff]  ;;  %v2501_v17 = vld [vmem:[%s3270_s3 + $0x70] sm:$0xff] }
  0x3b   : > { %858 = vmatpush.bf16.msrb.mxu0 %v1831_v20  ;;  %v2487_v16 = vld [vmem:[%s3270_s3] sm:$0xff]  ;;  %v2500_v18 = vld [vmem:[%s3270_s3 + $0x68] sm:$0xff]  ;;  %v2497_v23 = vld [vmem:[%s3270_s3 + $0x50] sm:$0xff] }
  0x3c   : > { %871 = vmatpush.bf16.msrb.mxu1 %v1895_v21  ;;  %v2499_v19 = vld [vmem:[%s3270_s3 + $0x60] sm:$0xff]  ;;  %v2498_v21 = vld [vmem:[%s3270_s3 + $0x58] sm:$0xff]  ;;  %v2496_v28 = vld [vmem:[%s3270_s3 + $0x48] sm:$0xff] }
  0x3d   : > { %884 = vmatpush.bf16.msrb.mxu2 %v1959_v22  ;;  %v477_v20 = vld [vmem:[%s3269_s2] sm:$0x3]  ;;  %v2506_v56 = vld [vmem:[%s3272_s5 + $0x18] sm:$0xff]  ;;  %v2155_v0 = vld [vmem:[%s3274_s7 + $0x30] sm:$0xf] }
  0x3e   : > { %897 = vmatpush.bf16.msrb.mxu3 %v2023_v26  ;;  %v479_v22 = vperm.slane %v477_v20, 0  ;;  %v480_v40 = vperm.slane %v477_v20, 1  ;;  %v2503_v63 = vld [vmem:[%s3272_s5] sm:$0xff]  ;;  %v2514_v1 = vld [vmem:[%s3274_s7 + $0x34] sm:$0xf0] }
  0x3f   : > { %859 = vmatpush.bf16.msrb.mxu0 %v1823_v32  ;;  %v2156_v3 = vor.u32 %v2514_v1, %v2155_v0  ;;  %v2157_v4 = vld [vmem:[%s3274_s7 + $0x38] sm:$0xf0]  ;;  %v2147_v5 = vld [vmem:[%s3274_s7 + $0x20] sm:$0xf]  ;;  %v2512_v6 = vld [vmem:[%s3274_s7 + $0x24] sm:$0xf0] }
  0x40   : > { %872 = vmatpush.bf16.msrb.mxu1 %v1887_v34  ;;  %v2495_v34 = vld [vmem:[%s3270_s3 + $0x40] sm:$0xff]  ;;  %v2375_v0 = vld [vmem:[#allocation2 + $0x1b0] sm:$0xf0] }
  0x41   : > { %885 = vmatpush.bf16.msrb.mxu2 %v1951_v35 }
  0x42   : > { %898 = vmatpush.bf16.msrb.mxu3 %v2015_v38 }
  0x43   : > { %860 = vmatpush.bf16.msrb.mxu0 %v1815_v44 }
  0x44   : > { %873 = vmatpush.bf16.msrb.mxu1 %v1879_v45 }
  0x45   : > { %886 = vmatpush.bf16.msrb.mxu2 %v1943_v46 }
  0x46   : > { %899 = vmatpush.bf16.msrb.mxu3 %v2007_v50 }
  0x47   : > { %861 = vmatpush.bf16.msrb.mxu0 %v1807_v59  ;;  %v2505_v59 = vld [vmem:[%s3272_s5 + $0x10] sm:$0xff] }
  0x48   : > { %874 = vmatpush.bf16.msrb.mxu1 %v1871_v61  ;;  %v2504_v61 = vld [vmem:[%s3272_s5 + $0x8] sm:$0xff] }
  0x49   : > { %887 = vmatpush.bf16.msrb.mxu2 %v1935_v62 }
  0x4a   : > { %900 = vmatpush.bf16.msrb.mxu3 %v1999_v2  ;;  %v2513_v2 = vld [vmem:[%s3274_s7 + $0x34] sm:$0xf] }
  0x4b   : > { %862 = vmatpush.bf16.msrb.mxu0 %v1799_v8  ;;  %v2160_v8 = vor.u32 %v2513_v2, %v2157_v4  ;;  %v2533_v4 = vld [vmem:[#allocation2 + $0x8c] sm:$0xf0] }
  0x4c   : > { %875 = vmatpush.bf16.msrb.mxu1 %v1863_v9  ;;  %v2511_v9 = vld [vmem:[%s3274_s7 + $0x24] sm:$0xf] }
  0x4d   : > { %888 = vmatpush.bf16.msrb.mxu2 %v1927_v10  ;;  %v2149_v10 = vld [vmem:[%s3274_s7 + $0x28] sm:$0xf0] }
  0x4e   : > { %901 = vmatpush.bf16.msrb.mxu3 %v1991_v11  ;;  %863 = vmatmul.bf16.vlgmr.msrb.gmra.mxu0 %v2975_v57  ;;  %v2490_v57 = vld [vmem:[%s3270_s3 + $0x18] sm:$0xff]  ;;  %v2148_v11 = vor.u32 %v2512_v6, %v2147_v5  ;;  %v2357_v5 = vld [vmem:[#allocation2 + $0x180] sm:$0xf] }
  0x4f   : > { %1043 = vmatpush.bf16.msra.mxu0 %v2494_v12  ;;  %876 = vmatmul.bf16.vlgmr.msrb.gmra.mxu1 %v2979_v60  ;;  %v2502_v60 = vld [vmem:[%s3270_s3 + $0x78] sm:$0xff]  ;;  %v2152_v12 = vor.u32 %v2511_v9, %v2149_v10  ;;  %v2231_v9 = vld [vmem:[#allocation2 + $0x90] sm:$0xf0]  ;;  %v2563_v10 = vld [vmem:[#allocation2 + $0x184] sm:$0xf] }
  0x50   : > { %889 = vmatmul.bf16.vlgmr.msrb.gmra.mxu2 %v2967_v54  ;;  %v2489_v54 = vld [vmem:[%s3270_s3 + $0x10] sm:$0xff]  ;;  %1056 = vmatpush.bf16.msra.mxu1 %v2502_v60  ;;  %v2600_v60 = vld [vmem:[%s3271_s4] ss:$0 sm:$0xff] }
  0x51   : > { %902 = vmatmul.bf16.vlgmr.msrb.gmra.mxu3 %v2977_v58  ;;  %v2488_v58 = vld [vmem:[%s3270_s3 + $0x8] sm:$0xff]  ;;  %1115 = vmatpush.bf16.msra.mxu2 %v2506_v56  ;;  %v2569_v56 = vld [vmem:[#allocation2 + $0x1ac] sm:$0xf0] }
  0x52   : > { %1186 = vmatpush.bf16.msra.mxu3 %v2156_v3  ;;  %v2229_v3 = vld [vmem:[#allocation2 + $0x80] sm:$0xf] }
  0x53   : > { %1044 = vmatpush.bf16.msra.mxu0 %v2493_v13  ;;  %v2139_v13 = vld [vmem:[%s3274_s7 + $0x10] sm:$0xf] }
  0x54   : > { %1057 = vmatpush.bf16.msra.mxu1 %v2501_v17 }
  0x55   : > { %1116 = vmatpush.bf16.msra.mxu2 %v2505_v59  ;;  %v2535_v59 = vld [vmem:[#allocation2 + $0xa4] sm:$0xf] }
  0x56   : > { %1187 = vmatpush.bf16.msra.mxu3 %v2148_v11  ;;  %v2359_v11 = vld [vmem:[#allocation2 + $0x190] sm:$0xf0] }
  0x57   : > { %1045 = vmatpush.bf16.msra.mxu0 %v2492_v14  ;;  %v2510_v14 = vld [vmem:[%s3274_s7 + $0x14] sm:$0xf0] }
  0x58   : > { %1058 = vmatpush.bf16.msra.mxu1 %v2500_v18 }
  0x59   : > { %1117 = vmatpush.bf16.msra.mxu2 %v2504_v61 }
  0x5b   : > { %1046 = vmatpush.bf16.msra.mxu0 %v2491_v15  ;;  %v2509_v15 = vld [vmem:[%s3274_s7 + $0x14] sm:$0xf] }
  0x5c   : > { %1059 = vmatpush.bf16.msra.mxu1 %v2499_v19 }
  0x5d   : > { %1118 = vmatpush.bf16.msra.mxu2 %v2503_v63  ;;  %v2567_v63 = vld [vmem:[#allocation2 + $0x1a4] sm:$0xf] }
  0x5e   : > { %v2378_v6 = vor.u32 %v2567_v63, %v2375_v0  ;;  %v2546_v63 = vld [vmem:[#allocation2 + $0xf4] sm:$0xf0]  ;;  %v2413_v0 = vld [vmem:[#allocation2 + $0x1e8] sm:$0xf] }
  0x5f   : > { %1047 = vmatpush.bf16.msra.mxu0 %v2490_v57  ;;  %v2141_v57 = vld [vmem:[%s3274_s7 + $0x18] sm:$0xf0] }
  0x60   : > { %1060 = vmatpush.bf16.msra.mxu1 %v2498_v21 }
  0x61   : > { %1199 = vmatpush.bf16.msrb.mxu2 %v2160_v8  ;;  %v2531_v8 = vld [vmem:[#allocation2 + $0x84] sm:$0xf] }
  0x63   : > { %1048 = vmatpush.bf16.msra.mxu0 %v2489_v54  ;;  %v2140_v54 = vor.u32 %v2510_v14, %v2139_v13  ;;  %v2234_v14 = vor.u32 %v2531_v8, %v2231_v9  ;;  %v2576_v9 = vld [vmem:[#allocation2 + $0x1ec] sm:$0xf] }
  0x64   : > { %1061 = vmatpush.bf16.msra.mxu1 %v2497_v23  ;;  %v2508_v23 = vld [vmem:[%s3274_s7 + $0x4] sm:$0xf0] }
  0x65   : > { %1200 = vmatpush.bf16.msrb.mxu2 %v2152_v12  ;;  %1188 = vmatpush.bf16.msra.mxu3 %v2140_v54  ;;  %v2230_v12 = vor.u32 %v2533_v4, %v2229_v3  ;;  %v2341_v54 = vld [vmem:[#allocation2 + $0x160] sm:$0xf]  ;;  %v2295_v4 = vld [vmem:[#allocation2 + $0x110] sm:$0xf0] }
  0x67   : > { %1049 = vmatpush.bf16.msra.mxu0 %v2488_v58  ;;  %v2144_v58 = vor.u32 %v2509_v15, %v2141_v57  ;;  %v2213_v15 = vld [vmem:[#allocation2 + $0x60] sm:$0xf]  ;;  %v2529_v57 = vld [vmem:[#allocation2 + $0x6c] sm:$0xf0] }
  0x68   : > { %1062 = vmatpush.bf16.msra.mxu1 %v2496_v28  ;;  %v2277_v28 = vld [vmem:[#allocation2 + $0xe0] sm:$0xf] }
  0x69   : > { %1201 = vmatpush.bf16.msrb.mxu2 %v2144_v58  ;;  %v2362_v58 = vor.u32 %v2563_v10, %v2359_v11  ;;  %v2415_v10 = vld [vmem:[#allocation2 + $0x1f8] sm:$0xf0] }
  0x6b   : > { %1050 = vmatpush.bf16.msra.mxu0 %v2487_v16 }
  0x6c   : > { %1063 = vmatpush.bf16.msra.mxu1 %v2495_v34  ;;  %v2279_v34 = vld [vmem:[#allocation2 + $0xf0] sm:$0xf0] }
  0xab   : > { %v812_v24 = vpop.f32.mrf.mxu0 }
  0xac   : > { %v813_v25 = vadd.f32 %v812_v24, %v479_v22  ;;  %v825_v26 = vpop.f32.mrf.mxu1  ;;  %v2131_v22 = vld [vmem:[%s3274_s7] sm:$0xf]  ;;  %v2507_v24 = vld [vmem:[%s3274_s7 + $0x4] sm:$0xf] }
  0xae   : > { %v826_v27 = vadd.f32 %v825_v26, %v813_v25  ;;  %v2132_v25 = vor.u32 %v2508_v23, %v2131_v22  ;;  %v2133_v26 = vld [vmem:[%s3274_s7 + $0x8] sm:$0xf0]  ;;  %v2197_v23 = vld [vmem:[#allocation2 + $0x40] sm:$0xf] }
  0xb0   : > { %1189 = vmatpush.bf16.msra.mxu3 %v2132_v25  ;;  %v2325_v25 = vld [vmem:[#allocation2 + $0x140] sm:$0xf] }
  0xb3   : > { %v838_v29 = vpop.f32.mrf.mxu2  ;;  %v814_v33 = vpop.f32.mrf.mxu0 }
  0xb4   : > { %v839_v30 = vadd.f32 %v838_v29, %v826_v27  ;;  %v851_v31 = vpop.f32.mrf.mxu3  ;;  %v827_v35 = vpop.f32.mrf.mxu1  ;;  %v2136_v27 = vor.u32 %v2507_v24, %v2133_v26  ;;  %v2545_v29 = vld [vmem:[#allocation2 + $0xec] sm:$0xf0]  ;;  %v2543_v33 = vld [vmem:[#allocation2 + $0xe4] sm:$0xf] }
  0xb5   : > { %v2525_v24 = vld [vmem:[#allocation2 + $0x4c] sm:$0xf0] }
  0xb6   : > { %v852_v32 = vadd.f32 %v851_v31, %v839_v30  ;;  %1202 = vmatpush.bf16.msrb.mxu2 %v2136_v27  ;;  %v2405_v30 = vld [vmem:[#allocation2 + $0x1e0] sm:$0xf]  ;;  %v2278_v31 = vor.u32 %v2545_v29, %v2277_v28  ;;  %v2557_v27 = vld [vmem:[#allocation2 + $0x14c] sm:$0xf0]  ;;  %v2523_v28 = vld [vmem:[#allocation2 + $0x44] sm:$0xf] }
  0xb7   : > { %v2199_v29 = vld [vmem:[#allocation2 + $0x50] sm:$0xf0] }
  0xb8   : > { %v907_v36 = vmax.f32 %v852_v32, 0.0  ;;  %v2577_v32 = vld [vmem:[#allocation2 + $0x1ec] sm:$0xf0]  ;;  %1606 = vmatpush.bf16.msrb.mxu3 %v2278_v31  ;;  %v2327_v31 = vld [vmem:[#allocation2 + $0x150] sm:$0xf0] }
  0xb9   : > { %v2406_v35 = vor.u32 %v2577_v32, %v2405_v30  ;;  %v2555_v30 = vld [vmem:[#allocation2 + $0x144] sm:$0xf]  ;;  %v2601_v32 = vld [vmem:[%s3273_s6] ss:$0 sm:$0xff] }
  0xba   : > { %v909_v37 = vpack.c.bf16 %v907_v36, %v907_v36  ;;  %v2282_v36 = vor.u32 %v2543_v33, %v2279_v34  ;;  %v2198_v33 = vor.u32 %v2525_v24, %v2197_v23  ;;  %v2326_v34 = vor.u32 %v2557_v27, %v2325_v25  ;;  %v2253_v25 = vld [vmem:[#allocation2 + $0xa8] sm:$0xf] }
  0xbb   : > { %v840_v38 = vpop.f32.mrf.mxu2  ;;  %1619 = vmatpush.bf16.msrb.mxu0 %v2406_v35  ;;  %v2202_v35 = vor.u32 %v2523_v28, %v2199_v29  ;;  %v2381_v27 = vld [vmem:[#allocation2 + $0x1a8] sm:$0xf]  ;;  %v2570_v29 = vld [vmem:[#allocation2 + $0x1b4] sm:$0xf0] }
  0xbc   : > { %1051 = vmatmul.bf16.vlgmr.msra.gmra.mxu0 %v909_v37  ;;  %v853_v39 = vpop.f32.mrf.mxu3  ;;  %v2575_v37 = vld [vmem:[#allocation2 + $0x1e4] sm:$0xf]  ;;  %v2407_v38 = vld [vmem:[#allocation2 + $0x1f0] sm:$0xf0]  ;;  %1632 = vmatpush.bf16.msrb.mxu1 %v2282_v36  ;;  %v2181_v36 = vld [vmem:[#allocation2 + $0x20] sm:$0xf] }
  0xbd   : > { %v2261_v39 = vld [vmem:[#allocation2 + $0xc0] sm:$0xf] }
  0xcb   : > { %v864_v41 = vpop.f32.mrf.mxu0 }
  0xcc   : > { %v865_v42 = vadd.f32 %v864_v41, %v480_v40  ;;  %v877_v43 = vpop.f32.mrf.mxu1  ;;  %v2410_v40 = vor.u32 %v2575_v37, %v2407_v38  ;;  %v2541_v41 = vld [vmem:[#allocation2 + $0xcc] sm:$0xf0]  ;;  %v2309_v38 = vld [vmem:[#allocation2 + $0x120] sm:$0xf] }
  0xcd   : > { %v2521_v37 = vld [vmem:[#allocation2 + $0x2c] sm:$0xf0] }
  0xce   : > { %v878_v44 = vadd.f32 %v877_v43, %v865_v42  ;;  %v2389_v42 = vld [vmem:[#allocation2 + $0x1c0] sm:$0xf]  ;;  %v2573_v43 = vld [vmem:[#allocation2 + $0x1cc] sm:$0xf0] }
  0xd3   : > { %v890_v45 = vpop.f32.mrf.mxu2  ;;  %v866_v48 = vpop.f32.mrf.mxu0 }
  0xd4   : > { %v891_v46 = vadd.f32 %v890_v45, %v878_v44  ;;  %v903_v47 = vpop.f32.mrf.mxu3  ;;  %v879_v49 = vpop.f32.mrf.mxu1  ;;  %v2262_v44 = vor.u32 %v2541_v41, %v2261_v39  ;;  %v2390_v45 = vor.u32 %v2573_v43, %v2389_v42  ;;  %v2571_v48 = vld [vmem:[#allocation2 + $0x1c4] sm:$0xf]  ;;  %v2330_v39 = vor.u32 %v2555_v30, %v2327_v31  ;;  %v2183_v42 = vld [vmem:[#allocation2 + $0x30] sm:$0xf0]  ;;  %v2536_v30 = vld [vmem:[#allocation2 + $0xac] sm:$0xf] }
  0xd5   : > { %v2519_v41 = vld [vmem:[#allocation2 + $0x24] sm:$0xf]  ;;  %v2255_v31 = vld [vmem:[#allocation2 + $0xb8] sm:$0xf0] }
  0xd6   : > { %v904_v50 = vadd.f32 %v903_v47, %v891_v46  ;;  %v2539_v46 = vld [vmem:[#allocation2 + $0xc4] sm:$0xf]  ;;  %v2263_v47 = vld [vmem:[#allocation2 + $0xd0] sm:$0xf0]  ;;  %1607 = vmatpush.bf16.msrb.mxu3 %v2262_v44  ;;  %1620 = vmatpush.bf16.msrb.mxu0 %v2390_v45  ;;  %v2182_v44 = vor.u32 %v2521_v37, %v2181_v36  ;;  %v2237_v37 = vld [vmem:[#allocation2 + $0x88] sm:$0xf] }
  0xd7   : > { %v2266_v49 = vor.u32 %v2539_v46, %v2263_v47  ;;  %v2551_v43 = vld [vmem:[#allocation2 + $0x124] sm:$0xf]  ;;  %v2311_v45 = vld [vmem:[#allocation2 + $0x130] sm:$0xf0]  ;;  %v2165_v46 = vld [vmem:[#allocation2] sm:$0xf] }
  0xd8   : > { %v908_v51 = vmax.f32 %v904_v50, 0.0  ;;  %v2391_v50 = vld [vmem:[#allocation2 + $0x1d0] sm:$0xf0]  ;;  %v2517_v47 = vld [vmem:[#allocation2 + $0xc] sm:$0xf0] }
  0xd9   : > { %1633 = vmatpush.bf16.msrb.mxu1 %v2266_v49  ;;  %v2166_v3 = vor.u32 %v2517_v47, %v2165_v46  ;;  %v2564_v46 = vld [vmem:[#allocation2 + $0x18c] sm:$0xf]  ;;  %v2367_v47 = vld [vmem:[#allocation2 + $0x198] sm:$0xf0] }
  0xda   : > { %v910_v52 = vpack.c.bf16 %v908_v51, %v908_v51  ;;  %v2245_v51 = vld [vmem:[#allocation2 + $0xa0] sm:$0xf] }
  0xdb   : > { %v892_v53 = vpop.f32.mrf.mxu2 }
  0xdc   : > { %v905_v55 = vpop.f32.mrf.mxu3  ;;  %1064 = vmatmul.bf16.vlgmr.msra.gmra.mxu1 %v910_v52  ;;  %v2537_v52 = vld [vmem:[#allocation2 + $0xac] sm:$0xf0]  ;;  %v2394_v53 = vor.u32 %v2571_v48, %v2391_v50  ;;  %v2186_v50 = vor.u32 %v2519_v41, %v2183_v42  ;;  %v2566_v41 = vld [vmem:[#allocation2 + $0x194] sm:$0xf0]  ;;  %v2532_v42 = vld [vmem:[#allocation2 + $0x8c] sm:$0xf] }
  0xdd   : > { %v2373_v55 = vld [vmem:[#allocation2 + $0x1a0] sm:$0xf]  ;;  %v2246_v61 = vor.u32 %v2537_v52, %v2245_v51  ;;  %v2549_v52 = vld [vmem:[#allocation2 + $0x10c] sm:$0xf0] }
  0xde   : > { %v2374_v1 = vor.u32 %v2569_v56, %v2373_v55  ;;  %v2293_v51 = vld [vmem:[#allocation2 + $0x100] sm:$0xf]  ;;  %v2167_v56 = vld [vmem:[#allocation2 + $0x10] sm:$0xf0] }
  0xdf   : > { %1608 = vmatpush.bf16.msrb.mxu3 %v2246_v61  ;;  %v2285_v61 = vld [vmem:[#allocation2 + $0xe8] sm:$0xf] }
  0xe0   : > { %1621 = vmatpush.bf16.msrb.mxu0 %v2374_v1  ;;  %v2578_v1 = vld [vmem:[#allocation2 + $0x1f4] sm:$0xf0]  ;;  %v2286_v11 = vor.u32 %v2546_v63, %v2285_v61  ;;  %v2351_v63 = vld [vmem:[#allocation2 + $0x178] sm:$0xf0] }
  0xe3   : > { %1609 = vmatpush.bf16.msrb.mxu3 %v2230_v12  ;;  %v2414_v12 = vor.u32 %v2578_v1, %v2413_v0  ;;  %v2205_v0 = vld [vmem:[#allocation2 + $0x48] sm:$0xf] }
 0x139   : > { %v1052_v62 = vpop.f32.mrf.mxu0 }
 0x13a   : > { %v1053_v16 = vadd.f32 %v2600_v60, %v1052_v62  ;;  %v2247_v62 = vld [vmem:[#allocation2 + $0xb0] sm:$0xf0]  ;;  %v2561_v60 = vld [vmem:[#allocation2 + $0x16c] sm:$0xf0] }
 0x13b   : > { %v2250_v2 = vor.u32 %v2535_v59, %v2247_v62  ;;  %v2547_v59 = vld [vmem:[#allocation2 + $0x104] sm:$0xf]  ;;  %v2314_v62 = vor.u32 %v2551_v43, %v2311_v45  ;;  %v2239_v43 = vld [vmem:[#allocation2 + $0x98] sm:$0xf0] }
 0x13c   : > { %v2242_v45 = vor.u32 %v2532_v42, %v2239_v43 }
 0x13d   : > { %1634 = vmatpush.bf16.msrb.mxu1 %v2250_v2 }
 0x141   : > { %v1054_v7 = vpop.f32.mrf.mxu0  ;;  %1635 = vmatpush.bf16.msrb.mxu1 %v2234_v14  ;;  %v2298_v14 = vor.u32 %v2547_v59, %v2295_v4  ;;  %v2558_v4 = vld [vmem:[#allocation2 + $0x154] sm:$0xf0] }
 0x142   : > { %v2565_v7 = vld [vmem:[#allocation2 + $0x18c] sm:$0xf0] }
 0x143   : > { %v2358_v13 = vor.u32 %v2565_v7, %v2357_v5  ;;  %v2544_v5 = vld [vmem:[#allocation2 + $0xec] sm:$0xf]  ;;  %v2294_v7 = vor.u32 %v2549_v52, %v2293_v51  ;;  %v2349_v51 = vld [vmem:[#allocation2 + $0x168] sm:$0xf] }
 0x145   : > { %1622 = vmatpush.bf16.msrb.mxu0 %v2358_v13  ;;  %v2269_v13 = vld [vmem:[#allocation2 + $0xc8] sm:$0xf] }
 0x159   : > { %v1065_v17 = vpop.f32.mrf.mxu1 }
 0x15a   : > { %v1066_v18 = vadd.f32 %v1065_v17, %v1053_v16  ;;  %v2527_v16 = vld [vmem:[#allocation2 + $0x64] sm:$0xf]  ;;  %v2215_v17 = vld [vmem:[#allocation2 + $0x70] sm:$0xf0] }
 0x15b   : > { %v2218_v22 = vor.u32 %v2527_v16, %v2215_v17  ;;  %v2540_v16 = vld [vmem:[#allocation2 + $0xcc] sm:$0xf]  ;;  %v2271_v17 = vld [vmem:[#allocation2 + $0xd8] sm:$0xf0] }
 0x15c   : > { %v1069_v19 = vmax.f32 %v1066_v18, 0.0  ;;  %v2559_v18 = vld [vmem:[#allocation2 + $0x164] sm:$0xf]  ;;  %v2274_v23 = vor.u32 %v2540_v16, %v2271_v17  ;;  %v2552_v16 = vld [vmem:[#allocation2 + $0x12c] sm:$0xf] }
 0x15d   : > { %1636 = vmatpush.bf16.msrb.mxu1 %v2218_v22  ;;  %v2319_v17 = vld [vmem:[#allocation2 + $0x138] sm:$0xf0] }
 0x15e   : > { %v1070_v20 = vpack.c.bf16 %v1069_v19, %v1069_v19  ;;  %v2343_v19 = vld [vmem:[#allocation2 + $0x170] sm:$0xf0] }
 0x15f   : > { %v2346_v26 = vor.u32 %v2559_v18, %v2343_v19  ;;  %v2572_v19 = vld [vmem:[#allocation2 + $0x1cc] sm:$0xf] }
 0x160   : > { %2128 = vmatmul.msk.bf16.vlgmr.msra.gmra.mxu2 %vm1107_vm0, %v1070_v20  ;;  %v2214_v20 = vor.u32 %v2529_v57, %v2213_v15  ;;  %v2542_v57 = vld [vmem:[#allocation2 + $0xd4] sm:$0xf0] }
 0x161   : > { %v1067_v21 = vpop.f32.mrf.mxu1  ;;  %1645 = vmatpush.bf16.msra.mxu2 %v2410_v40  ;;  %v2553_v40 = vld [vmem:[#allocation2 + $0x12c] sm:$0xf0]  ;;  %1637 = vmatpush.bf16.msrb.mxu1 %v2202_v35  ;;  %v2383_v35 = vld [vmem:[#allocation2 + $0x1b8] sm:$0xf0] }
 0x162   : > { %v2342_v21 = vor.u32 %v2561_v60, %v2341_v54  ;;  %1610 = vmatpush.bf16.msrb.mxu3 %v2214_v20  ;;  %v2310_v49 = vor.u32 %v2553_v40, %v2309_v38  ;;  %v2397_v54 = vld [vmem:[#allocation2 + $0x1c8] sm:$0xf]  ;;  %v2418_v60 = vor.u32 %v2576_v9, %v2415_v10  ;;  %v2399_v20 = vld [vmem:[#allocation2 + $0x1d8] sm:$0xf0]  ;;  %v2534_v38 = vld [vmem:[#allocation2 + $0x94] sm:$0xf0] }
 0x163   : > { %v2402_v24 = vor.u32 %v2572_v19, %v2399_v20  ;;  %v2238_v40 = vor.u32 %v2534_v38, %v2237_v37  ;;  %v2556_v9 = vld [vmem:[#allocation2 + $0x14c] sm:$0xf]  ;;  %v2173_v20 = vld [vmem:[#allocation2 + $0x8] sm:$0xf] }
 0x164   : > { %1623 = vmatpush.bf16.msrb.mxu0 %v2342_v21  ;;  %v2270_v21 = vor.u32 %v2542_v57, %v2269_v13  ;;  %v2522_v13 = vld [vmem:[#allocation2 + $0x34] sm:$0xf0] }
 0x165   : > { %1646 = vmatpush.bf16.msra.mxu2 %v2394_v53  ;;  %v2515_v53 = vld [vmem:[#allocation2 + $0x4] sm:$0xf]  ;;  %1638 = vmatpush.bf16.msrb.mxu1 %v2186_v50  ;;  %v2530_v50 = vld [vmem:[#allocation2 + $0x74] sm:$0xf0] }
 0x166   : > { %1611 = vmatpush.bf16.msrb.mxu3 %v2198_v33  ;;  %v2170_v8 = vor.u32 %v2515_v53, %v2167_v56  ;;  %v2258_v33 = vor.u32 %v2536_v30, %v2255_v31  ;;  %v2562_v53 = vld [vmem:[#allocation2 + $0x174] sm:$0xf0]  ;;  %v2223_v56 = vld [vmem:[#allocation2 + $0x78] sm:$0xf0] }
 0x167   : > { %v2350_v59 = vor.u32 %v2562_v53, %v2349_v51  ;;  %v2554_v57 = vld [vmem:[#allocation2 + $0x134] sm:$0xf0] }
 0x168   : > { %1624 = vmatpush.bf16.msrb.mxu0 %v2326_v34  ;;  %v2568_v34 = vld [vmem:[#allocation2 + $0x1ac] sm:$0xf] }
 0x169   : > { %1647 = vmatpush.bf16.msra.mxu2 %v2378_v6  ;;  %v2287_v6 = vld [vmem:[#allocation2 + $0xf8] sm:$0xf0]  ;;  %1639 = vmatpush.bf16.msrb.mxu1 %v2170_v8  ;;  %v2386_v36 = vor.u32 %v2568_v34, %v2383_v35 }
 0x16a   : > { %1612 = vmatpush.bf16.msrb.mxu3 %v2182_v44  ;;  %v2290_v15 = vor.u32 %v2544_v5, %v2287_v6  ;;  %v2207_v8 = vld [vmem:[#allocation2 + $0x58] sm:$0xf0] }
 0x16c   : > { %1625 = vmatpush.bf16.msrb.mxu0 %v2310_v49  ;;  %v2221_v49 = vld [vmem:[#allocation2 + $0x68] sm:$0xf] }
 0x16d   : > { %1648 = vmatpush.bf16.msra.mxu2 %v2362_v58  ;;  %v2574_v58 = vld [vmem:[#allocation2 + $0x1d4] sm:$0xf0]  ;;  %1684 = vmatpush.bf16.msra.mxu1 %v2290_v15  ;;  %v2222_v52 = vor.u32 %v2530_v50, %v2221_v49  ;;  %v2317_v15 = vld [vmem:[#allocation2 + $0x128] sm:$0xf] }
 0x16e   : > { %1613 = vmatpush.bf16.msrb.mxu3 %v2166_v3  ;;  %v2398_v22 = vor.u32 %v2574_v58, %v2397_v54  ;;  %v2333_v3 = vld [vmem:[#allocation2 + $0x148] sm:$0xf]  ;;  %v2520_v54 = vld [vmem:[#allocation2 + $0x2c] sm:$0xf] }
 0x16f   : > { %v2334_v6 = vor.u32 %v2558_v4, %v2333_v3 }
 0x170   : > { %1626 = vmatpush.bf16.msrb.mxu0 %v2294_v7  ;;  %v2524_v7 = vld [vmem:[#allocation2 + $0x4c] sm:$0xf] }
 0x171   : > { %1649 = vmatpush.bf16.msra.mxu2 %v2346_v26  ;;  %1685 = vmatpush.bf16.msra.mxu1 %v2274_v23  ;;  %v2538_v26 = vld [vmem:[#allocation2 + $0xb4] sm:$0xf0]  ;;  %v2210_v10 = vor.u32 %v2524_v7, %v2207_v8  ;;  %v2322_v23 = vor.u32 %v2552_v16, %v2319_v17 }
 0x172   : > { %v2254_v28 = vor.u32 %v2538_v26, %v2253_v25  ;;  %v2516_v25 = vld [vmem:[#allocation2 + $0xc] sm:$0xf]  ;;  %v2175_v26 = vld [vmem:[#allocation2 + $0x18] sm:$0xf0] }
 0x173   : > { %v2178_v31 = vor.u32 %v2516_v25, %v2175_v26 }
 0x174   : > { %1671 = vmatpush.bf16.msra.mxu0 %v2414_v12  ;;  %v2189_v12 = vld [vmem:[#allocation2 + $0x28] sm:$0xf] }
 0x175   : > { %1650 = vmatpush.bf16.msra.mxu2 %v2330_v39  ;;  %1686 = vmatpush.bf16.msra.mxu1 %v2258_v33  ;;  %v2365_v39 = vld [vmem:[#allocation2 + $0x188] sm:$0xf]  ;;  %v2190_v58 = vor.u32 %v2522_v13, %v2189_v12  ;;  %v1133_v33 = vld [vmem:[%s3275_s8] sm:$0x3] }
 0x176   : > { %v2366_v44 = vor.u32 %v2566_v41, %v2365_v39  ;;  %v1135_v34 = vperm.slane %v1133_v33, 0  ;;  %v1136_v35 = vperm.slane %v1133_v33, 1 }
 0x178   : > { %1672 = vmatpush.bf16.msra.mxu0 %v2398_v22  ;;  %v2301_v22 = vld [vmem:[#allocation2 + $0x108] sm:$0xf] }
 0x179   : > { %1651 = vmatpush.bf16.msra.mxu2 %v2314_v62  ;;  %1687 = vmatpush.bf16.msra.mxu1 %v2242_v45  ;;  %v2560_v62 = vld [vmem:[#allocation2 + $0x16c] sm:$0xf] }
 0x17a   : > { %v2354_v1 = vor.u32 %v2560_v62, %v2351_v63 }
 0x17d   : > { %1652 = vmatpush.bf16.msra.mxu2 %v2298_v14 }
 0x1e3   : > { %v1120_v48 = vpop.f32.mrf.mxu2 }
 0x1e4   : > { %v1121_v55 = vadd.f32 %v2601_v32, %v1120_v48  ;;  %v2382_v32 = vor.u32 %v2570_v29, %v2381_v27  ;;  %v2370_v48 = vor.u32 %v2564_v46, %v2367_v47  ;;  %v2548_v27 = vld [vmem:[#allocation2 + $0x10c] sm:$0xf]  ;;  %v1276_v46 = vld [vmem:[%s3277_s10] sm:$0xf] }
 0x1e5   : > { %v1279_v49 = vperm.slane %v1276_v46, 1  ;;  %v1278_v50 = vperm.slane %v1276_v46, 0  ;;  %v1281_v3 = vperm.slane %v1276_v46, 3  ;;  %v1280_v4 = vperm.slane %v1276_v46, 2 }
 0x1e6   : > { %v1124_v2 = vpack.c.bf16 %v1121_v55, %v1121_v55  ;;  %1673 = vmatpush.bf16.msra.mxu0 %v2382_v32  ;;  %v2528_v55 = vld [vmem:[#allocation2 + $0x6c] sm:$0xf] }
 0x1e7   : > { %v2226_v61 = vor.u32 %v2528_v55, %v2223_v56 }
 0x1e8   : > { %2161 = vmatmul.msk.bf16.vlgmr.msra.gmra.mxu3 %vm1107_vm0, %v1124_v2  ;;  %2162 = vmatmul.msk.bf16.vlgmr.msrb.gmra.mxu2 %vm1107_vm0, %v1124_v2  ;;  %v2526_v2 = vld [vmem:[#allocation2 + $0x54] sm:$0xf0] }
 0x1e9   : > { %1658 = vmatpush.bf16.msra.mxu3 %v2286_v11  ;;  %1697 = vmatpush.bf16.msrb.mxu2 %v2418_v60  ;;  %v2206_v5 = vor.u32 %v2526_v2, %v2205_v0  ;;  %v2335_v11 = vld [vmem:[#allocation2 + $0x158] sm:$0xf0] }
 0x1ea   : > { %1674 = vmatpush.bf16.msra.mxu0 %v2366_v44  ;;  %1688 = vmatpush.bf16.msra.mxu1 %v2226_v61  ;;  %v2338_v14 = vor.u32 %v2556_v9, %v2335_v11  ;;  %v2191_v60 = vld [vmem:[#allocation2 + $0x38] sm:$0xf0] }
 0x1eb   : > { %v1122_v18 = vpop.f32.mrf.mxu2  ;;  %v2194_v19 = vor.u32 %v2520_v54, %v2191_v60 }
 0x1ec   : > { %v2318_v18 = vor.u32 %v2554_v57, %v2317_v15 }
 0x1ed   : > { %1659 = vmatpush.bf16.msra.mxu3 %v2270_v21  ;;  %1698 = vmatpush.bf16.msrb.mxu2 %v2402_v24  ;;  %v2518_v21 = vld [vmem:[#allocation2 + $0x14] sm:$0xf0] }
 0x1ee   : > { %1675 = vmatpush.bf16.msra.mxu0 %v2350_v59  ;;  %1689 = vmatpush.bf16.msra.mxu1 %v2210_v10  ;;  %v2550_v24 = vld [vmem:[#allocation2 + $0x114] sm:$0xf0]  ;;  %v2174_v29 = vor.u32 %v2518_v21, %v2173_v20 }
 0x1ef   : > { %v2302_v30 = vor.u32 %v2550_v24, %v2301_v22 }
 0x1f1   : > { %1660 = vmatpush.bf16.msra.mxu3 %v2254_v28  ;;  %1699 = vmatpush.bf16.msrb.mxu2 %v2386_v36  ;;  %v2303_v28 = vld [vmem:[#allocation2 + $0x118] sm:$0xf0] }
 0x1f2   : > { %1676 = vmatpush.bf16.msra.mxu0 %v2334_v6  ;;  %1690 = vmatpush.bf16.msra.mxu1 %v2194_v19  ;;  %v2306_v32 = vor.u32 %v2548_v27, %v2303_v28 }
 0x1f5   : > { %1661 = vmatpush.bf16.msra.mxu3 %v2238_v40  ;;  %1700 = vmatpush.bf16.msrb.mxu2 %v2370_v48 }
 0x1f6   : > { %1677 = vmatpush.bf16.msra.mxu0 %v2318_v18  ;;  %1691 = vmatpush.bf16.msra.mxu1 %v2178_v31 }
 0x1f9   : > { %1662 = vmatpush.bf16.msra.mxu3 %v2222_v52  ;;  %1701 = vmatpush.bf16.msrb.mxu2 %v2354_v1 }
 0x1fa   : > { %1678 = vmatpush.bf16.msra.mxu0 %v2302_v30 }
 0x1fd   : > { %1663 = vmatpush.bf16.msra.mxu3 %v2206_v5  ;;  %1702 = vmatpush.bf16.msrb.mxu2 %v2338_v14 }
 0x201   : > { %1664 = vmatpush.bf16.msra.mxu3 %v2190_v58  ;;  %1703 = vmatpush.bf16.msrb.mxu2 %v2322_v23 }
 0x205   : > { %1665 = vmatpush.bf16.msra.mxu3 %v2174_v29  ;;  %1704 = vmatpush.bf16.msrb.mxu2 %v2306_v32 }
 0x26b   : > { %v1191_v36 = vpop.f32.mrf.mxu3  ;;  %v1204_v37 = vpop.f32.mrf.mxu2 }
 0x26c   : > { %v1192_v38 = vadd.f32 %v1191_v36, %v1135_v34  ;;  %v1205_v39 = vadd.f32 %v1204_v37, %v1136_v35 }
 0x26e   : > { %v1208_v40 = vmax.f32 %v1192_v38, 0.0  ;;  %v1209_v41 = vmax.f32 %v1205_v39, 0.0 }
 0x270   : > { %v1210_v42 = vpack.c.bf16 %v1208_v40, %v1208_v40  ;;  %v1211_v43 = vpack.c.bf16 %v1209_v41, %v1209_v41 }
 0x272   : > { %1614 = vmatmul.bf16.vlgmr.msrb.gmra.mxu3 %v1210_v42  ;;  %1627 = vmatmul.bf16.vlgmr.msrb.gmra.mxu0 %v1211_v43 }
 0x273   : > { %1640 = vmatmul.bf16.vlgmr.msrb.gmra.mxu1 %v1210_v42  ;;  %1653 = vmatmul.bf16.vlgmr.msra.gmra.mxu2 %v1211_v43  ;;  %v1193_v44 = vpop.f32.mrf.mxu3  ;;  %v1206_v45 = vpop.f32.mrf.mxu2 }
 0x282   : > { %1666 = vmatmul.bf16.vlgmr.msra.gmra.mxu3 %v1210_v42  ;;  %1679 = vmatmul.bf16.vlgmr.msra.gmra.mxu0 %v1211_v43 }
 0x283   : > { %1692 = vmatmul.bf16.vlgmr.msra.gmra.mxu1 %v1210_v42  ;;  %1705 = vmatmul.bf16.vlgmr.msrb.gmra.mxu2 %v1211_v43 }
 0x2ef   : > { %v1628_v47 = vpop.f32.mrf.mxu0 }
 0x2f0   : > { %v1641_v48 = vpop.f32.mrf.mxu1 }
 0x2f1   : > { %v1642_v51 = vadd.f32 %v1641_v48, %v1279_v49 }
 0x2f5   : > { %v1615_v52 = vpop.f32.mrf.mxu3 }
 0x2f6   : > { %v1616_v53 = vadd.f32 %v1615_v52, %v1278_v50  ;;  %v1654_v55 = vpop.f32.mrf.mxu2 }
 0x2f7   : > { %v1655_v56 = vadd.f32 %v1654_v55, %v1642_v51  ;;  %v1630_v59 = vpop.f32.mrf.mxu0 }
 0x2f8   : > { %v1629_v61 = vadd.f32 %v1628_v47, %v1616_v53  ;;  %v1643_v62 = vpop.f32.mrf.mxu1 }
 0x2f9   : > { %1711 = vst [vmem:[%s403_s28 + $0x8] sm:$0xff] %v1655_v56 }
 0x2fa   : > { %1710 = vst [vmem:[%s403_s28] sm:$0xff] %v1629_v61 }
 0x2fd   : > { %v1617_v63 = vpop.f32.mrf.mxu3 }
 0x2fe   : > { %v1656_v0 = vpop.f32.mrf.mxu2 }
 0x2ff   : > { %v1680_v1 = vpop.f32.mrf.mxu0 }
 0x300   : > { %v1693_v2 = vpop.f32.mrf.mxu1 }
 0x301   : > { %v1694_v5 = vadd.f32 %v1693_v2, %v1281_v3 }
 0x305   : > { %v1667_v6 = vpop.f32.mrf.mxu3 }
 0x306   : > { %v1668_v7 = vadd.f32 %v1667_v6, %v1280_v4  ;;  %v1706_v8 = vpop.f32.mrf.mxu2 }
 0x307   : > { %v1707_v9 = vadd.f32 %v1706_v8, %v1694_v5  ;;  %v1682_v10 = vpop.f32.mrf.mxu0 }
 0x308   : > { %v1681_v11 = vadd.f32 %v1680_v1, %v1668_v7  ;;  %v1695_v12 = vpop.f32.mrf.mxu1 }
 0x309   : > { %1713 = vst [vmem:[%s403_s28 + $0x18] sm:$0xff] %v1707_v9 }
 0x30a   : > { %1712 = vst [vmem:[%s403_s28 + $0x10] sm:$0xff] %v1681_v11 }
 0x30d   : > { %v1669_v13 = vpop.f32.mrf.mxu3 }
 0x30e   : > { %v1708_v14 = vpop.f32.mrf.mxu2 }
 0x30f PF: > { %s22_s17 = sadd.s32 1, %s2642_s17  }
 0x310   : > { %p19_p7 = scmp.ge.s32.totalorder %s22_s17, 4  }
 0x312   :  { %21 = sbr.rel (!%p19_p7) target bundleno = 1 (0x1), region = 99 }
 0x317   :  { %1735 = vsyncpa [#allocation3], 1 }
 0x318   :  { %1737 = vsyncpa [#allocation3 + $0x1], 1 }

</bundles_post_ra>
